<compile_context>
chip_gen: v6e
topology: v6e:2x2x1
jax: 0.10.0
libtpu: 0.0.40
codegen_flags: <defaults>
</compile_context>

<pallas_src>
import functools

import jax
import jax.numpy as jnp
from jax.experimental import pallas as pl
from jax.experimental.pallas import tpu as pltpu

_BN_EPS = 1e-5


# ----------------------------- helpers -------------------------------------

def _round_up(x, m):
    return (x + m - 1) // m * m


def _pick_row_tile(m):
    """Row (M) tile: multiple of 16 (bf16 sublane-friendly); >=128 when possible."""
    m16 = _round_up(m, 16)
    if m16 <= 512:
        return m16, m16
    for tm in (512, 256, 128):
        if m16 % tm == 0:
            return tm, m16
    return 128, _round_up(m16, 128)


def _pick_col_tile(n):
    """Output-channel tile: lane-dense (multiple of 128)."""
    np_ = _round_up(n, 128)
    if np_ >= 512 and np_ % 256 == 0:
        return 256, np_
    return 128, np_


def _pick_k_tile(k):
    """Reduction tile: single step for small K, else 512-wide K tiles."""
    if k <= 1024:
        return k, k
    return 512, _round_up(k, 512)


def _pad2d(a, rows, cols, dtype):
    a = a.astype(dtype)
    if a.shape == (rows, cols):
        return a
    return jnp.zeros((rows, cols), dtype).at[:a.shape[0], :a.shape[1]].set(a)


# ----------------------------- Pallas kernels ------------------------------

def _mm_bn_kernel(x_ref, w_ref, s_ref, b_ref, o_ref, acc_ref, *, apply_relu):
    """(tm, tk) x (tk, tn) matmul accumulated over the K grid axis, with a
    folded-BatchNorm (+ optional ReLU) epilogue on the final K step."""
    k = pl.program_id(2)

    @pl.when(k == 0)
    def _():
        acc_ref[...] = jnp.zeros_like(acc_ref)

    acc_ref[...] += jnp.dot(x_ref[...], w_ref[...],
                            preferred_element_type=jnp.float32)

    @pl.when(k == pl.num_programs(2) - 1)
    def _():
        acc = acc_ref[...] * s_ref[...] + b_ref[...]
        if apply_relu:
            acc = jnp.maximum(acc, 0.0)
        o_ref[...] = acc.astype(o_ref.dtype)


def _mm_bn_add_relu_kernel(x_ref, w_ref, s_ref, b_ref, r_ref, o_ref, acc_ref):
    """Same as above, plus residual-add before the final ReLU (block epilogue)."""
    k = pl.program_id(2)

    @pl.when(k == 0)
    def _():
        acc_ref[...] = jnp.zeros_like(acc_ref)

    acc_ref[...] += jnp.dot(x_ref[...], w_ref[...],
                            preferred_element_type=jnp.float32)

    @pl.when(k == pl.num_programs(2) - 1)
    def _():
        acc = acc_ref[...] * s_ref[...] + b_ref[...]
        acc = acc + r_ref[...].astype(jnp.float32)
        acc = jnp.maximum(acc, 0.0)
        o_ref[...] = acc.astype(o_ref.dtype)


def fused_conv_bn(x_rows, w_mat, scale, shift, residual=None, apply_relu=True,
                  out_dtype=jnp.bfloat16):
    """x_rows: (M, K) activation rows (im2col); w_mat: (K, Cout).

    Computes relu?(bn(x_rows @ w_mat) [+ residual]) fused in one Pallas kernel.
    MXU operands are bf16; accumulation and the epilogue are f32; the result is
    cast to `out_dtype` at the store.  Returns (M, Cout).
    """
    M, K = x_rows.shape
    Cout = w_mat.shape[1]

    tm, Mp = _pick_row_tile(M)
    tn, Np = _pick_col_tile(Cout)
    tk, Kp = _pick_k_tile(K)

    x_p = _pad2d(x_rows, Mp, Kp, jnp.bfloat16)
    w_p = _pad2d(w_mat, Kp, Np, jnp.bfloat16)
    s_p = jnp.zeros((1, Np), jnp.float32).at[:, :Cout].set(
        scale.reshape(1, Cout).astype(jnp.float32))
    b_p = jnp.zeros((1, Np), jnp.float32).at[:, :Cout].set(
        shift.reshape(1, Cout).astype(jnp.float32))

    grid = (Mp // tm, Np // tn, Kp // tk)

    in_specs = [
        pl.BlockSpec((tm, tk), lambda i, j, k: (i, k)),
        pl.BlockSpec((tk, tn), lambda i, j, k: (k, j)),
        pl.BlockSpec((1, tn), lambda i, j, k: (0, j)),
        pl.BlockSpec((1, tn), lambda i, j, k: (0, j)),
    ]
    args = [x_p, w_p, s_p, b_p]

    if residual is None:
        kernel = functools.partial(_mm_bn_kernel, apply_relu=apply_relu)
    else:
        kernel = _mm_bn_add_relu_kernel
        r_p = _pad2d(residual, Mp, Np, jnp.bfloat16)
        in_specs.append(pl.BlockSpec((tm, tn), lambda i, j, k: (i, j)))
        args.append(r_p)

    out_bytes = Mp * Np * jnp.dtype(out_dtype).itemsize
    bytes_accessed = (x_p.size * 2 * (Np // tn)        # x re-read per Cout tile
                      + w_p.size * 2 * (Mp // tm)      # w re-read per M tile
                      + out_bytes
                      + (Mp * Np * 2 if residual is not None else 0))
    cost = pl.CostEstimate(flops=2 * Mp * Kp * Np, transcendentals=0,
                           bytes_accessed=int(bytes_accessed))

    out = pl.pallas_call(
        kernel,
        out_shape=jax.ShapeDtypeStruct((Mp, Np), out_dtype),
        grid=grid,
        in_specs=in_specs,
        out_specs=pl.BlockSpec((tm, tn), lambda i, j, k: (i, j)),
        scratch_shapes=[pltpu.VMEM((tm, tn), jnp.float32)],
        compiler_params=pltpu.CompilerParams(
            dimension_semantics=("parallel", "parallel", "arbitrary")),
        cost_estimate=cost,
    )(*args)

    return out[:M, :Cout]


# ------------------------------- JAX glue ----------------------------------

def _extract_patches_nhwc(x, ksize, stride, pad):
    """x: (N, H, W, C) bf16 -> (N*Ho*Wo, ksize*ksize*C) im2col rows (tap-major).

    TODO(synk): fold this into the kernel (tap grid axis + accumulator) so the
    9x-expanded patch tensor never hits HBM; for now it is kept but in bf16.
    """
    N, H, W, C = x.shape
    xp = jnp.pad(x, ((0, 0), (pad, pad), (pad, pad), (0, 0)))
    Ho = (H + 2 * pad - ksize) // stride + 1
    Wo = (W + 2 * pad - ksize) // stride + 1
    cols = []
    for dy in range(ksize):
        for dx in range(ksize):
            cols.append(
                xp[:, dy:dy + Ho * stride:stride, dx:dx + Wo * stride:stride, :])
    patches = jnp.concatenate(cols, axis=-1)          # (N, Ho, Wo, k*k*C)
    return patches.reshape(N * Ho * Wo, ksize * ksize * C), Ho, Wo


def _weight_to_matmul(w_oihw):
    """(Cout, Cin, kh, kw) -> (kh*kw*Cin, Cout), tap-major to match patches."""
    Cout, Cin, kh, kw = w_oihw.shape
    return jnp.transpose(w_oihw, (2, 3, 1, 0)).reshape(kh * kw * Cin, Cout)


def _bn_fold(bn):
    scale = bn["gamma"] / jnp.sqrt(bn["var"] + _BN_EPS)
    shift = bn["beta"] - bn["mean"] * scale
    return scale, shift


def prepare_block_params(params):
    """One-time preprocessing: weight re-layout to matmul form (bf16) + BN fold."""
    prep = {
        "w1": _weight_to_matmul(params["w1"]).astype(jnp.bfloat16),
        "w2": _weight_to_matmul(params["w2"]).astype(jnp.bfloat16),
        "bn1": _bn_fold(params["bn1"]),
        "bn2": _bn_fold(params["bn2"]),
        "planes": int(params["w1"].shape[0]),
    }
    if "wd" in params:
        prep["wd"] = _weight_to_matmul(params["wd"]).astype(jnp.bfloat16)
        prep["bn3"] = _bn_fold(params["bn3"])
    return prep


def basic_block_forward(x_nchw, prep, stride):
    """Pallas implementation of BasicBlock.forward (inference-mode BN).

    x_nchw: (N, Cin, H, W) float32.  Returns (N, planes, Ho, Wo) float32.
    """
    planes = prep["planes"]

    # NCHW -> NHWC (bf16) once at the module boundary; everything else is NHWC.
    x = jnp.transpose(x_nchw, (0, 2, 3, 1)).astype(jnp.bfloat16)
    N, H, W, Cin = x.shape

    # conv1 (3x3, stride, pad 1) -> bn1 -> relu            [bf16 out]
    p1, Ho, Wo = _extract_patches_nhwc(x, 3, stride, 1)
    s1, b1 = prep["bn1"]
    out1 = fused_conv_bn(p1, prep["w1"], s1, b1,
                         residual=None, apply_relu=True,
                         out_dtype=jnp.bfloat16)
    out1_nhwc = out1.reshape(N, Ho, Wo, planes)

    # residual branch
    if stride != 1 or Cin != planes:
        # 1x1 stride-s pad-0 conv == strided spatial subsample + matmul.
        xd = x[:, ::stride, ::stride, :].reshape(N * Ho * Wo, Cin)
        s3, b3 = prep["bn3"]
        residual = fused_conv_bn(xd, prep["wd"], s3, b3,
                                 residual=None, apply_relu=False,
                                 out_dtype=jnp.bfloat16)
    else:
        residual = x.reshape(N * H * W, Cin)

    # conv2 (3x3, stride 1, pad 1) -> bn2 -> (+ residual) -> relu   [f32 out]
    p2, Ho2, Wo2 = _extract_patches_nhwc(out1_nhwc, 3, 1, 1)
    s2, b2 = prep["bn2"]
    out = fused_conv_bn(p2, prep["w2"], s2, b2,
                        residual=residual, apply_relu=True,
                        out_dtype=jnp.float32)

    out_nhwc = out.reshape(N, Ho2, Wo2, planes)
    return jnp.transpose(out_nhwc, (0, 3, 1, 2))      # back to NCHW


# ------------------------------ reference ----------------------------------

def _ref_forward(x, params, stride):
    """f32 reference that mirrors the kernel's intentional bf16 quantization
    points (MXU operands and inter-kernel bf16 activations) so the comparison
    isolates kernel/layout correctness."""
    q = lambda a: a.astype(jnp.bfloat16).astype(jnp.float32)

    def conv(a, w, s, pad):
        return jax.lax.conv_general_dilated(
            q(a), q(w), (s, s), ((pad, pad), (pad, pad)),
            dimension_numbers=("NCHW", "OIHW", "NCHW"),
            precision=jax.lax.Precision.HIGHEST)

    def bn(a, p):
        scale = p["gamma"] / jnp.sqrt(p["var"] + _BN_EPS)
        shift = p["beta"] - p["mean"] * scale
        return a * scale[None, :, None, None] + shift[None, :, None, None]

    out1 = q(jax.nn.relu(bn(conv(x, params["w1"], stride, 1), params["bn1"])))
    out = bn(conv(out1, params["w2"], 1, 1), params["bn2"])
    if "wd" in params:
        res = q(bn(conv(x, params["wd"], stride, 0), params["bn3"]))
    else:
        res = q(x)
    return jax.nn.relu(out + res)


# ------------------------------- params ------------------------------------

def _bn_params(key, c):
    k1, k2, k3, k4 = jax.random.split(key, 4)
    return {
        "gamma": 1.0 + 0.1 * jax.random.normal(k1, (c,), jnp.float32),
        "beta": 0.1 * jax.random.normal(k2, (c,), jnp.float32),
        "mean": 0.1 * jax.random.normal(k3, (c,), jnp.float32),
        "var": 0.5 + jnp.abs(jax.random.normal(k4, (c,), jnp.float32)),
    }


def init_params(key, in_planes, planes, stride):
    ks = jax.random.split(key, 6)
    params = {
        "w1": 0.2 * jax.random.normal(ks[0], (planes, in_planes, 3, 3), jnp.float32),
        "w2": 0.2 * jax.random.normal(ks[1], (planes, planes, 3, 3), jnp.float32),
        "bn1": _bn_params(ks[2], planes),
        "bn2": _bn_params(ks[3], planes),
    }
    if stride != 1 or in_planes != planes:
        params["wd"] = 0.2 * jax.random.normal(
            ks[4], (planes, in_planes, 1, 1), jnp.float32)
        params["bn3"] = _bn_params(ks[5], planes)
    return params


# --------------------------------- main -------------------------------------

def _run_case(key, in_planes, planes, stride, spatial=16, batch=2):
    kx, kp = jax.random.split(key)
    x = jax.random.normal(kx, (batch, in_planes, spatial, spatial), jnp.float32)
    params = init_params(kp, in_planes, planes, stride)
    prep = prepare_block_params(params)

    out = jax.block_until_ready(basic_block_forward(x, prep, stride))
    ref = jax.block_until_ready(_ref_forward(x, params, stride))

    assert out.shape == ref.shape, (out.shape, ref.shape)
    # bf16 MXU operands by design -> compare against a quantization-matched ref.
    assert jnp.allclose(out, ref, atol=2e-2, rtol=2e-2), (
        float(jnp.max(jnp.abs(out - ref))))


if __name__ == "__main__":
    key = jax.random.PRNGKey(0)
    k1, k2 = jax.random.split(key)

    # downsample path (stride 2, channel change)
    _run_case(k1, in_planes=4, planes=8, stride=2)
    # identity-residual path (stride 1, same channels)
    _run_case(k2, in_planes=8, planes=8, stride=1)

    print("KERNEL_OK")
</pallas_src>

<mosaic_0001>
module attributes {stable_mosaic.version = 11 : i64} {
  func.func @_mm_bn_kernel(%arg0: i32, %arg1: i32, %arg2: i32, %arg3: memref<128x36xbf16, #tpu.memory_space<vmem>>, %arg4: memref<36x128xbf16, #tpu.memory_space<vmem>>, %arg5: memref<1x128xf32, #tpu.memory_space<vmem>>, %arg6: memref<1x128xf32, #tpu.memory_space<vmem>>, %arg7: memref<128x128xbf16, #tpu.memory_space<vmem>>, %arg8: memref<128x128xf32, #tpu.memory_space<vmem>>) attributes {dimension_semantics = [#tpu.dimension_semantics<parallel>, #tpu.dimension_semantics<parallel>, #tpu.dimension_semantics<arbitrary>], iteration_bounds = array<i64: 1, 1, 1>, scalar_prefetch = 0 : i64, scratch_operands = 1 : i64, tpu.core_type = #tpu.core_type<tc>, window_params = [{transform_indices = @transform_0, window_bounds = array<i64: 128, 36>}, {transform_indices = @transform_1, window_bounds = array<i64: 36, 128>}, {transform_indices = @transform_2, window_bounds = array<i64: 1, 128>}, {transform_indices = @transform_3, window_bounds = array<i64: 1, 128>}, {transform_indices = @transform_4, window_bounds = array<i64: 128, 128>}]} {
    %c0_i32 = arith.constant 0 : i32
    %0 = arith.cmpi eq, %arg2, %c0_i32 : i32
    %1 = arith.extui %0 : i1 to i32
    %c0_i32_0 = arith.constant 0 : i32
    %2 = arith.cmpi ne, %1, %c0_i32_0 : i32
    scf.if %2 {
      %cst_10 = arith.constant 0.000000e+00 : f32
      %12 = vector.broadcast %cst_10 : f32 to vector<128x128xf32>
      %c0_11 = arith.constant 0 : index
      %c0_12 = arith.constant 0 : index
      %13 = vector.load %arg8[%c0_11, %c0_12] : memref<128x128xf32, #tpu.memory_space<vmem>>, vector<128x128xf32>
      tpu.vector_store %arg8[%c0_11, %c0_12], %12 {strides = array<i32>} : memref<128x128xf32, #tpu.memory_space<vmem>>, vector<128x128xf32>,
    } else {
    }
    %c0 = arith.constant 0 : index
    %c0_1 = arith.constant 0 : index
    %3 = vector.load %arg8[%c0, %c0_1] : memref<128x128xf32, #tpu.memory_space<vmem>>, vector<128x128xf32>
    %c0_2 = arith.constant 0 : index
    %c0_3 = arith.constant 0 : index
    %4 = vector.load %arg3[%c0_2, %c0_3] : memref<128x36xbf16, #tpu.memory_space<vmem>>, vector<128x36xbf16>
    %c0_4 = arith.constant 0 : index
    %c0_5 = arith.constant 0 : index
    %5 = vector.load %arg4[%c0_4, %c0_5] : memref<36x128xbf16, #tpu.memory_space<vmem>>, vector<36x128xbf16>
    %cst = arith.constant dense<0.000000e+00> : vector<128x128xf32>
    %6 = tpu.matmul %4, %5, %cst {dimension_numbers = #tpu.dot_dimension_numbers<[1], [0], [0], [1], [0, 0, 1, 1], [], []>} : vector<128x36xbf16>, vector<36x128xbf16>, vector<128x128xf32> -> vector<128x128xf32>
    %7 = arith.addf %3, %6 : vector<128x128xf32>
    %c0_6 = arith.constant 0 : index
    %c0_7 = arith.constant 0 : index
    %8 = vector.load %arg8[%c0_6, %c0_7] : memref<128x128xf32, #tpu.memory_space<vmem>>, vector<128x128xf32>
    tpu.vector_store %arg8[%c0_6, %c0_7], %7 {strides = array<i32>} : memref<128x128xf32, #tpu.memory_space<vmem>>, vector<128x128xf32>,
    %c0_i32_8 = arith.constant 0 : i32
    %9 = arith.cmpi eq, %arg2, %c0_i32_8 : i32
    %10 = arith.extui %9 : i1 to i32
    %c0_i32_9 = arith.constant 0 : i32
    %11 = arith.cmpi ne, %10, %c0_i32_9 : i32
    scf.if %11 {
      %c0_10 = arith.constant 0 : index
      %c0_11 = arith.constant 0 : index
      %12 = vector.load %arg8[%c0_10, %c0_11] : memref<128x128xf32, #tpu.memory_space<vmem>>, vector<128x128xf32>
      %c0_12 = arith.constant 0 : index
      %c0_13 = arith.constant 0 : index
      %13 = vector.load %arg5[%c0_12, %c0_13] : memref<1x128xf32, #tpu.memory_space<vmem>>, vector<1x128xf32>
      %14 = vector.broadcast %13 : vector<1x128xf32> to vector<128x128xf32>
      %15 = arith.mulf %12, %14 : vector<128x128xf32>
      %c0_14 = arith.constant 0 : index
      %c0_15 = arith.constant 0 : index
      %16 = vector.load %arg6[%c0_14, %c0_15] : memref<1x128xf32, #tpu.memory_space<vmem>>, vector<1x128xf32>
      %17 = vector.broadcast %16 : vector<1x128xf32> to vector<128x128xf32>
      %18 = arith.addf %15, %17 : vector<128x128xf32>
      %cst_16 = arith.constant 0.000000e+00 : f32
      %19 = vector.broadcast %cst_16 : f32 to vector<128x128xf32>
      %20 = arith.maximumf %18, %19 : vector<128x128xf32>
      %21 = arith.truncf %20 : vector<128x128xf32> to vector<128x128xbf16>
      %c0_17 = arith.constant 0 : index
      %c0_18 = arith.constant 0 : index
      %22 = vector.load %arg7[%c0_17, %c0_18] : memref<128x128xbf16, #tpu.memory_space<vmem>>, vector<128x128xbf16>
      tpu.vector_store %arg7[%c0_17, %c0_18], %21 {strides = array<i32>} : memref<128x128xbf16, #tpu.memory_space<vmem>>, vector<128x128xbf16>,
    } else {
    }
    return
  }
  func.func @transform_0(%arg0: i32, %arg1: i32, %arg2: i32) -> (i32, i32) {
    %c0_i32 = arith.constant 0 : i32
    return %arg0, %arg2 : i32, i32
  }
  func.func @transform_1(%arg0: i32, %arg1: i32, %arg2: i32) -> (i32, i32) {
    %c0_i32 = arith.constant 0 : i32
    return %arg2, %arg1 : i32, i32
  }
  func.func @transform_2(%arg0: i32, %arg1: i32, %arg2: i32) -> (i32, i32) {
    %c0_i32 = arith.constant 0 : i32
    %c0_i32_0 = arith.constant 0 : i32
    return %c0_i32, %arg1 : i32, i32
  }
  func.func @transform_3(%arg0: i32, %arg1: i32, %arg2: i32) -> (i32, i32) {
    %c0_i32 = arith.constant 0 : i32
    %c0_i32_0 = arith.constant 0 : i32
    return %c0_i32, %arg1 : i32, i32
  }
  func.func @transform_4(%arg0: i32, %arg1: i32, %arg2: i32) -> (i32, i32) {
    %c0_i32 = arith.constant 0 : i32
    return %arg0, %arg1 : i32, i32
  }
}

</mosaic_0001>

<bundles_post_ra>
// kernel: tpu_custom_call.1
= control target key start
LH: loop header
LB: loop body
LE: loop exit
PB: predicated region body
PF: predicated region fallthrough
CT: control target
= control target key end

     0   :  { %vm156_vm0 = vcmask 1041408   ;;  %vm131_vm1 = vcmask 293888   ;;  %s721_s0 = inlined_call_operand.vmem [shape: bf16[128,36], index: 0, kind: input, shape index: {}]   ;;  %s722_s1 = inlined_call_operand.vmem [shape: bf16[36,128], index: 1, kind: input, shape index: {}]   ;;  %s723_s2 = inlined_call_operand.vmem [shape: f32[1,128], index: 2, kind: input, shape index: {}]   ;;  %s724_s3 = inlined_call_operand.vmem [shape: f32[1,128], index: 3, kind: input, shape index: {}]   ;;  %s725_s4 = inlined_call_operand.hbm [shape: bf16[128,128], index: 4, kind: output, shape index: {}]  }
   0x1   :  { %v610_v0 = vld [vmem:[%s722_s1 + $0x10] ss:$0 sps:$4 sm:$0x33]   ;;  %v611_v1 = vld [vmem:[%s722_s1 + $0x8] sm:$0xff]   ;;  %v612_v3 = vld [vmem:[%s722_s1] sm:$0xff]  }
   0x2   :  { %605 = vmatprep.subr.msk.bf16.mxu0 %vm156_vm0, %v610_v0  ;;  %606 = vmatprep.subr.msk.bf16.mxu1 %vm156_vm0, %v610_v0  ;;  %v158_v2 = vsel %vm156_vm0, %v610_v0, 0  ;;  %v613_v4 = vld [vmem:[%s721_s0] sm:$0xff]   ;;  %v615_v6 = vld [vmem:[%s721_s0 + $0x8] sm:$0xff]   ;;  %v617_v8 = vld [vmem:[%s721_s0 + $0x10] sm:$0xff]  }
   0x3   :  { %578 = vmatpush3.bf16.msra.mxu0 %v158_v2  ;;  %602 = vmatpush3.bf16.msra.mxu1 %v158_v2  ;;  %v614_v5 = vld [vmem:[%s721_s0 + $0x20] sm:$0xff]   ;;  %v616_v7 = vld [vmem:[%s721_s0 + $0x28] sm:$0xff]   ;;  %v618_v9 = vld [vmem:[%s721_s0 + $0x30] sm:$0xff]  }
   0x4   :  { %579 = vmatprep.subr.bf16.mxu0 %v611_v1  ;;  %600 = vmatprep.subr.bf16.mxu1 %v611_v1 }
   0x5   :  { %583 = vmatprep.mubr.msk.bf16.mxu0 %vm131_vm1, %v613_v4  ;;  %591 = vmatprep.mubr.msk.bf16.mxu1 %vm131_vm1, %v614_v5 }
   0x7   :  { %580 = vmatpush3.bf16.msra.mxu0 %v611_v1  ;;  %603 = vmatpush3.bf16.msra.mxu1 %v611_v1 }
   0x8   :  { %581 = vmatprep.subr.bf16.mxu0 %v612_v3  ;;  %601 = vmatprep.subr.bf16.mxu1 %v612_v3 }
   0xb   :  { %582 = vmatpush3.bf16.msra.mxu0 %v612_v3  ;;  %604 = vmatpush3.bf16.msra.mxu1 %v612_v3 }
   0xc   :  { %9 = vsyncpa [#allocation4], 0  ;;  %v619_v10 = vld [vmem:[%s721_s0 + $0x18] sm:$0xff]   ;;  %v485_v12 = vld [vmem:[%s723_s2] ss:$0 sm:$0xff] }
   0xd   :  { %v620_v11 = vld [vmem:[%s721_s0 + $0x38] sm:$0xff]   ;;  %v486_v17 = vld [vmem:[%s724_s3] ss:$0 sm:$0xff]  ;;  %s643_s0 = smov [#allocation3]  }
   0xe   :  { %584 = vmatmul.mubr.msk.bf16.vlgmr.msra.gmra.mxu0 %vm131_vm1, %v615_v6  ;;  %592 = vmatmul.mubr.msk.bf16.vlgmr.msra.gmra.mxu1 %vm131_vm1, %v616_v7  ;;  %s455_s2 = sshll.u32 %s643_s0, 4  ;;  %s456_s2 = int_to_ptr.vmem [resolvable:$true] %s455_s2 }
   0xf   :  { %587 = vmatprep.mubr.msk.bf16.mxu0 %vm131_vm1, %v617_v8  ;;  %595 = vmatprep.mubr.msk.bf16.mxu1 %vm131_vm1, %v618_v9  ;;  %s621_s3 = scalar_lea.vmem %s456_s2, 1024  ;;  %p626_p1 = scmp.lt.s32.totalorder %s456_s2, %s456_s2 }
  0x10   :  { %p622_p0 = scmp.ne.s32.totalorder %s456_s2, %s621_s3  ;;  %p627_p2 = scmp.lt.s32.totalorder %s621_s3, %s621_s3 }
  0x12   :  { %p628_p3 = por %p627_p2, %p626_p1 }
  0x14   :  { %p629_p4 = pnand %p628_p3, %p622_p0 }
  0x16   :  { %588 = vmatmul.mubr.msk.bf16.gmra.mxu0 %vm131_vm1, %v619_v10  ;;  %596 = vmatmul.mubr.msk.bf16.gmra.mxu1 %vm131_vm1, %v620_v11 }
  0xce   :  { %v585_v13 = vpop.f32.mrf.mxu0  ;;  %v593_v14 = vpop.f32.mrf.mxu1 }
  0xcf   :  { %v317_v15 = vmul.f32 %v585_v13, %v485_v12  ;;  %v325_v16 = vmul.f32 %v593_v14, %v485_v12 }
  0xd0   :  { %v194_v18 = vpop.f32.mrf.mxu0  ;;  %v226_v19 = vpop.f32.mrf.mxu1 }
  0xd1   :  { %v315_v20 = vmul.f32 %v485_v12, %v194_v18  ;;  %v323_v21 = vmul.f32 %v485_v12, %v226_v19  ;;  %v340_v24 = vadd.f32 %v486_v17, %v317_v15  ;;  %v348_v25 = vadd.f32 %v486_v17, %v325_v16 }
  0xd2   :  { %v586_v22 = vpop.f32.mrf.mxu0  ;;  %v594_v23 = vpop.f32.mrf.mxu1 }
  0xd3   :  { %v318_v26 = vmul.f32 %v586_v22, %v485_v12  ;;  %v326_v27 = vmul.f32 %v594_v23, %v485_v12  ;;  %v338_v30 = vadd.f32 %v486_v17, %v315_v20  ;;  %v346_v31 = vadd.f32 %v486_v17, %v323_v21 }
  0xd4   :  { %v197_v28 = vpop.f32.mrf.mxu0  ;;  %v229_v29 = vpop.f32.mrf.mxu1  ;;  %v356_v38 = vmax.f32 %v340_v24, 0.0  ;;  %v364_v39 = vmax.f32 %v348_v25, 0.0 }
  0xd5   :  { %v316_v32 = vmul.f32 %v485_v12, %v197_v28  ;;  %v324_v33 = vmul.f32 %v485_v12, %v229_v29  ;;  %v341_v34 = vadd.f32 %v486_v17, %v318_v26  ;;  %v349_v35 = vadd.f32 %v486_v17, %v326_v27 }
  0xd6   :  { %v589_v36 = vpop.f32.mrf.mxu0  ;;  %v597_v37 = vpop.f32.mrf.mxu1  ;;  %v354_v48 = vmax.f32 %v338_v30, 0.0  ;;  %v362_v49 = vmax.f32 %v346_v31, 0.0 }
  0xd7   :  { %v339_v40 = vadd.f32 %v486_v17, %v316_v32  ;;  %v347_v41 = vadd.f32 %v486_v17, %v324_v33  ;;  %v357_v42 = vmax.f32 %v341_v34, 0.0  ;;  %v365_v43 = vmax.f32 %v349_v35, 0.0 }
  0xd8   :  { %v321_v44 = vmul.f32 %v589_v36, %v485_v12  ;;  %v329_v45 = vmul.f32 %v597_v37, %v485_v12  ;;  %v210_v46 = vpop.f32.mrf.mxu0  ;;  %v242_v47 = vpop.f32.mrf.mxu1 }
  0xd9   :  { %v355_v50 = vmax.f32 %v339_v40, 0.0  ;;  %v363_v51 = vmax.f32 %v347_v41, 0.0  ;;  %v527_v52 = vpack.c.bf16 %v357_v42, %v356_v38  ;;  %v547_v53 = vpack.c.bf16 %v365_v43, %v364_v39 }
  0xda   :  { %v319_v54 = vmul.f32 %v485_v12, %v210_v46  ;;  %v327_v55 = vmul.f32 %v485_v12, %v242_v47  ;;  %v590_v56 = vpop.f32.mrf.mxu0  ;;  %v598_v57 = vpop.f32.mrf.mxu1  ;;  %v344_v60 = vadd.f32 %v486_v17, %v321_v44  ;;  %v352_v61 = vadd.f32 %v486_v17, %v329_v45 }
  0xdb   :  { %v522_v58 = vpack.c.bf16 %v355_v50, %v354_v48  ;;  %v542_v59 = vpack.c.bf16 %v363_v51, %v362_v49  ;;  %559 = vst [vmem:[#allocation3 + $0x8] sm:$0xff] %v527_v52   ;;  %563 = vst [vmem:[#allocation3 + $0x28] sm:$0xff] %v547_v53   ;;  %v322_v62 = vmul.f32 %v590_v56, %v485_v12 }
  0xdc   :  { %v330_v63 = vmul.f32 %v598_v57, %v485_v12  ;;  %v213_v0 = vpop.f32.mrf.mxu0  ;;  %v245_v1 = vpop.f32.mrf.mxu1  ;;  %v342_v2 = vadd.f32 %v486_v17, %v319_v54  ;;  %v350_v3 = vadd.f32 %v486_v17, %v327_v55  ;;  %v360_v10 = vmax.f32 %v344_v60, 0.0 }
  0xdd   :  { %523 = vst [vmem:[#allocation3] sm:$0xff] %v522_v58   ;;  %562 = vst [vmem:[#allocation3 + $0x20] sm:$0xff] %v542_v59   ;;  %v320_v4 = vmul.f32 %v485_v12, %v213_v0  ;;  %v328_v5 = vmul.f32 %v485_v12, %v245_v1  ;;  %v345_v6 = vadd.f32 %v486_v17, %v322_v62  ;;  %v368_v11 = vmax.f32 %v352_v61, 0.0 }
  0xde   :  { %v353_v7 = vadd.f32 %v486_v17, %v330_v63  ;;  %v358_v15 = vmax.f32 %v342_v2, 0.0  ;;  %v366_v16 = vmax.f32 %v350_v3, 0.0 }
  0xdf   :  { %v343_v8 = vadd.f32 %v486_v17, %v320_v4  ;;  %v351_v9 = vadd.f32 %v486_v17, %v328_v5  ;;  %v361_v13 = vmax.f32 %v345_v6, 0.0 }
  0xe0   :  { %v369_v14 = vmax.f32 %v353_v7, 0.0 }
  0xe1   :  { %v359_v18 = vmax.f32 %v343_v8, 0.0  ;;  %v367_v19 = vmax.f32 %v351_v9, 0.0  ;;  %v537_v20 = vpack.c.bf16 %v361_v13, %v360_v10 }
  0xe2   :  { %v557_v21 = vpack.c.bf16 %v369_v14, %v368_v11 }
  0xe3   :  { %v532_v22 = vpack.c.bf16 %v359_v18, %v358_v15  ;;  %v552_v23 = vpack.c.bf16 %v367_v19, %v366_v16  ;;  %561 = vst [vmem:[#allocation3 + $0x18] sm:$0xff] %v537_v20  }
  0xe4   :  { %565 = vst [vmem:[#allocation3 + $0x38] sm:$0xff] %v557_v21  }
  0xe5   :  { %560 = vst [vmem:[#allocation3 + $0x10] sm:$0xff] %v532_v22   ;;  %564 = vst [vmem:[#allocation3 + $0x30] sm:$0xff] %v552_v23  }
  0xe6   :  { %632 = shalt.err (!%p629_p4)
}
  0xe7   :  { %s644_s14 = smov 64   ;;  %s645_s15 = smov 4  }
  0xe8   :  { %461 = dma.vmem_to_hbm [thread:$0]  %s456_s2, 1024, %s725_s4, [#allocation4], %s644_s14, %s644_s14, %s645_s15  }
  0xe9   :  { %641 = dma.done.wait [#allocation4], 1024  }
  0xea   :  { %642 = vsyncadd [#allocation4], 4294966272 }
  0xeb   :  { %465 = vsyncpa [#allocation4], 1 }

</bundles_post_ra>
